<compile_context>
chip_gen: v7x
topology: tpu7x:2x2x1
jax: 0.10.0
libtpu: 0.0.40
codegen_flags: <defaults>
</compile_context>

<pallas_src>
import functools
import math

import numpy as np

import jax
import jax.numpy as jnp
from jax.experimental import pallas as pl
from jax.experimental.pallas import tpu as pltpu


# ---------------------------------------------------------------------------
# Fused Pallas kernel: conv-as-matmul (+bias) -> capsule-row re-block -> squash
# ---------------------------------------------------------------------------
def _primary_caps_kernel(lhs_ref, rhs_ref, red_ref, bro_ref, o_ref,
                         *, n_blk, p, p_pad, m_tot):
    # lhs_ref: (n_blk*m_tot, B*K+1)  re-blocked conv weight + bias column
    # rhs_ref: (B*K+1, p)            stacked im2col patches + ones row (bias)
    # red_ref: (n_blk*p_pad, G)      0/1 element->capsule reduce matrix
    # bro_ref: (G, n_blk*p_pad)      0/1 capsule->element broadcast matrix
    # o_ref:   (m_tot, n_blk*p_pad)  squashed capsule rows (lane-padded blocks)

    # Conv + bias as a single MXU matmul (bias rides on the ones row of rhs).
    res = jnp.dot(lhs_ref[...], rhs_ref[...],
                  preferred_element_type=jnp.float32)           # (n_blk*m_tot, p)

    # Re-block: output row m, lane block c  <-  conv channel r*n_blk + c.
    # Block stores land at 128-aligned lane offsets (simple masked stores).
    o_ref[...] = jnp.zeros_like(o_ref)                          # zero the pad lanes
    for c in range(n_blk):                                      # static unroll
        o_ref[:, c * p_pad:c * p_pad + p] = res[c * m_tot:(c + 1) * m_tot, :]
    x = o_ref[...]                                              # (m_tot, n_blk*p_pad)

    # Per-capsule squared norm broadcast back to every element: two skinny dots.
    sn = jnp.dot(jnp.dot(x * x, red_ref[...], preferred_element_type=jnp.float32),
                 bro_ref[...], preferred_element_type=jnp.float32)

    # squash: (sn/(1+sn)) * x / sqrt(sn)  ==  x * sqrt(sn) / (1 + sn)
    # (exact f32; evaluates to 0 on pad lanes / zero-norm capsules, no NaN)
    o_ref[...] = x * jnp.sqrt(sn) / (1.0 + sn)


# ---------------------------------------------------------------------------
# JAX glue
# ---------------------------------------------------------------------------
def _im2col(x, kernel_size, stride):
    """x: (B, C, H, W) -> patches (B, C*k*k, Ho*Wo); K ordered (c, kh, kw)."""
    B, C, H, W = x.shape
    k = kernel_size
    Ho = (H - k) // stride + 1
    Wo = (W - k) // stride + 1
    cols = []
    for kh in range(k):
        for kw in range(k):
            cols.append(x[:, :, kh:kh + stride * Ho:stride, kw:kw + stride * Wo:stride])
    patches = jnp.stack(cols, axis=2)                  # (B, C, k*k, Ho, Wo)
    patches = patches.reshape(B, C * k * k, Ho * Wo)   # (B, K, P)
    return patches, Ho, Wo


@functools.partial(jax.jit, static_argnames=("kernel_size", "stride", "out_channels"))
def primary_caps_forward(x, weight, bias, *, kernel_size, stride, out_channels):
    """PrimaryCaps forward.

    x:      (B, C_in, H, W)           float32, NCHW
    weight: (C_out_total, C_in, k, k) float32  (PyTorch conv weight layout)
    bias:   (C_out_total,)            float32
    returns (B, num_caps, out_channels)
    """
    B, C_in, H, W = x.shape
    C_out_total = weight.shape[0]
    D = out_channels

    patches, Ho, Wo = _im2col(x, kernel_size, stride)   # (B, K, P)
    P = Ho * Wo
    K = C_in * kernel_size * kernel_size

    flat = C_out_total * P
    if flat % D != 0:
        raise ValueError(
            f"C_out_total*H'*W' = {flat} is not divisible by out_channels={D}")
    num_caps = flat // D

    # Capsule-row layout: one output row = n_blk whole conv channels laid side
    # by side (row_w elements); row_w is a multiple of D so capsules never
    # straddle rows, and the flat order matches PyTorch's channel-major view.
    row_w = P * D // math.gcd(P, D)            # lcm(P, D)
    n_blk = row_w // P                         # conv channels per output row
    if C_out_total % n_blk != 0:
        # TODO(synk): generalize by growing row_w to a multiple that divides flat.
        raise ValueError(f"out_channels total {C_out_total} not divisible by {n_blk}")
    rows_pb = C_out_total // n_blk             # output rows per batch element
    m_tot = B * rows_pb                        # total output rows (sublane dim)
    n_caps_row = row_w // D                    # capsules per row
    p_pad = (P + 127) // 128 * 128             # lane-aligned stride of each block
    row_w_pad = n_blk * p_pad

    # --- matmul RHS: per-batch patches stacked on the contraction dim + ones row
    rhs = jnp.concatenate(
        [patches.reshape(B * K, P), jnp.ones((1, P), patches.dtype)], axis=0)

    # --- matmul LHS: row q = c*m_tot + (b*rows_pb + r) selects conv channel
    #     ch = r*n_blk + c of batch b, plus its bias in the last column.
    q = np.arange(n_blk * m_tot)
    c_q = q // m_tot
    m_q = q % m_tot
    b_q = m_q // rows_pb
    r_q = m_q % rows_pb
    ch_q = r_q * n_blk + c_q
    w2d = weight.reshape(C_out_total, K)
    batch_sel = jnp.asarray((np.arange(B)[None, :] == b_q[:, None]).astype(np.float32))
    lhs = jnp.concatenate(
        [(batch_sel[:, :, None] * w2d[ch_q][:, None, :]).reshape(q.size, B * K),
         bias[ch_q][:, None]],
        axis=1)                                             # (n_blk*m_tot, B*K+1)

    # --- squash segment-sum / broadcast constants (account for lane padding)
    jp = np.arange(row_w_pad)
    blk = jp // p_pad
    off = jp % p_pad
    valid = off < P
    cap = np.where(valid, (blk * P + np.where(valid, off, 0)) // D, n_caps_row)
    red = jnp.asarray((cap[:, None] == np.arange(n_caps_row)[None, :])
                      .astype(np.float32))                  # (row_w_pad, G)
    bro = jnp.asarray(red.T)                                # (G, row_w_pad)

    vmem = pltpu.MemorySpace.VMEM
    out_pad = pl.pallas_call(
        functools.partial(_primary_caps_kernel,
                          n_blk=n_blk, p=P, p_pad=p_pad, m_tot=m_tot),
        out_shape=jax.ShapeDtypeStruct((m_tot, row_w_pad), jnp.float32),
        in_specs=[pl.BlockSpec(memory_space=vmem)] * 4,
        out_specs=pl.BlockSpec(memory_space=vmem),
    )(lhs, rhs, red, bro)

    # Strip the lane padding (tiny) — remaining reshapes are free / contiguous
    # and reproduce PyTorch's .view(B, -1, out_channels) flatten exactly.
    out = out_pad.reshape(m_tot, n_blk, p_pad)[:, :, :P]
    return out.reshape(B, num_caps, D)


# ---------------------------------------------------------------------------
# Pure-JAX reference (sanity check only)
# ---------------------------------------------------------------------------
def _reference(x, weight, bias, *, kernel_size, stride, out_channels):
    conv = jax.lax.conv_general_dilated(
        x, weight, window_strides=(stride, stride), padding="VALID",
        dimension_numbers=("NCHW", "OIHW", "NCHW"))
    conv = conv + bias[None, :, None, None]
    B = conv.shape[0]
    caps = conv.reshape(B, -1, out_channels)
    sn = jnp.sum(caps * caps, axis=-1, keepdims=True)
    return (sn / (1.0 + sn)) * caps / jnp.sqrt(sn)


if __name__ == "__main__":
    # Module config (small): num_conv_units=4, in_channels=4, out_channels=8,
    # kernel_size=3, stride=2
    num_conv_units = 4
    in_channels = 4
    out_channels = 8
    kernel_size = 3
    stride = 2
    C_out_total = out_channels * num_conv_units  # 32

    B, H, W = 2, 16, 16

    key = jax.random.PRNGKey(0)
    kx, kw, kb = jax.random.split(key, 3)
    x = jax.random.normal(kx, (B, in_channels, H, W), dtype=jnp.float32)
    weight = 0.1 * jax.random.normal(
        kw, (C_out_total, in_channels, kernel_size, kernel_size), dtype=jnp.float32)
    bias = 0.05 * jax.random.normal(kb, (C_out_total,), dtype=jnp.float32)

    out = primary_caps_forward(
        x, weight, bias,
        kernel_size=kernel_size, stride=stride, out_channels=out_channels)
    out = jax.block_until_ready(out)

    ref = _reference(
        x, weight, bias,
        kernel_size=kernel_size, stride=stride, out_channels=out_channels)

    assert out.shape == ref.shape, (out.shape, ref.shape)
    assert jnp.allclose(out, ref, rtol=1e-4, atol=1e-4), (
        float(jnp.max(jnp.abs(out - ref))))

    print("KERNEL_OK")
</pallas_src>

<mosaic_0001>
module attributes {stable_mosaic.version = 11 : i64} {
  func.func @_primary_caps_kernel(%arg0: memref<64x73xf32, #tpu.memory_space<vmem>>, %arg1: memref<73x49xf32, #tpu.memory_space<vmem>>, %arg2: memref<1024x49xf32, #tpu.memory_space<vmem>>, %arg3: memref<49x1024xf32, #tpu.memory_space<vmem>>, %arg4: memref<8x1024xf32, #tpu.memory_space<vmem>>) attributes {dimension_semantics = [], scalar_prefetch = 0 : i64, scratch_operands = 0 : i64, tpu.core_type = #tpu.core_type<tc>} {
    %c0 = arith.constant 0 : index
    %c0_0 = arith.constant 0 : index
    %0 = vector.load %arg0[%c0, %c0_0] : memref<64x73xf32, #tpu.memory_space<vmem>>, vector<64x73xf32>
    %c0_1 = arith.constant 0 : index
    %c0_2 = arith.constant 0 : index
    %1 = vector.load %arg1[%c0_1, %c0_2] : memref<73x49xf32, #tpu.memory_space<vmem>>, vector<73x49xf32>
    %cst = arith.constant dense<0.000000e+00> : vector<64x49xf32>
    %2 = tpu.matmul %0, %1, %cst {dimension_numbers = #tpu.dot_dimension_numbers<[1], [0], [0], [1], [0, 0, 1, 1], [], []>} : vector<64x73xf32>, vector<73x49xf32>, vector<64x49xf32> -> vector<64x49xf32>
    %cst_3 = arith.constant 0.000000e+00 : f32
    %3 = vector.broadcast %cst_3 : f32 to vector<8x1024xf32>
    %c0_4 = arith.constant 0 : index
    %c0_5 = arith.constant 0 : index
    %4 = vector.load %arg4[%c0_4, %c0_5] : memref<8x1024xf32, #tpu.memory_space<vmem>>, vector<8x1024xf32>
    tpu.vector_store %arg4[%c0_4, %c0_5], %3 {strides = array<i32>} : memref<8x1024xf32, #tpu.memory_space<vmem>>, vector<8x1024xf32>,
    %5 = vector.extract_strided_slice %2 {offsets = [0, 0], sizes = [8, 49], strides = [1, 1]} : vector<64x49xf32> to vector<8x49xf32>
    %c0_6 = arith.constant 0 : index
    %c0_7 = arith.constant 0 : index
    %6 = vector.load %arg4[%c0_6, %c0_7] : memref<8x1024xf32, #tpu.memory_space<vmem>>, vector<8x49xf32>
    tpu.vector_store %arg4[%c0_6, %c0_7], %5 {strides = array<i32>} : memref<8x1024xf32, #tpu.memory_space<vmem>>, vector<8x49xf32>,
    %7 = vector.extract_strided_slice %2 {offsets = [8, 0], sizes = [8, 49], strides = [1, 1]} : vector<64x49xf32> to vector<8x49xf32>
    %c0_8 = arith.constant 0 : index
    %c128 = arith.constant 128 : index
    %8 = vector.load %arg4[%c0_8, %c128] : memref<8x1024xf32, #tpu.memory_space<vmem>>, vector<8x49xf32>
    tpu.vector_store %arg4[%c0_8, %c128], %7 {strides = array<i32>} : memref<8x1024xf32, #tpu.memory_space<vmem>>, vector<8x49xf32>,
    %9 = vector.extract_strided_slice %2 {offsets = [16, 0], sizes = [8, 49], strides = [1, 1]} : vector<64x49xf32> to vector<8x49xf32>
    %c0_9 = arith.constant 0 : index
    %c256 = arith.constant 256 : index
    %10 = vector.load %arg4[%c0_9, %c256] : memref<8x1024xf32, #tpu.memory_space<vmem>>, vector<8x49xf32>
    tpu.vector_store %arg4[%c0_9, %c256], %9 {strides = array<i32>} : memref<8x1024xf32, #tpu.memory_space<vmem>>, vector<8x49xf32>,
    %11 = vector.extract_strided_slice %2 {offsets = [24, 0], sizes = [8, 49], strides = [1, 1]} : vector<64x49xf32> to vector<8x49xf32>
    %c0_10 = arith.constant 0 : index
    %c384 = arith.constant 384 : index
    %12 = vector.load %arg4[%c0_10, %c384] : memref<8x1024xf32, #tpu.memory_space<vmem>>, vector<8x49xf32>
    tpu.vector_store %arg4[%c0_10, %c384], %11 {strides = array<i32>} : memref<8x1024xf32, #tpu.memory_space<vmem>>, vector<8x49xf32>,
    %13 = vector.extract_strided_slice %2 {offsets = [32, 0], sizes = [8, 49], strides = [1, 1]} : vector<64x49xf32> to vector<8x49xf32>
    %c0_11 = arith.constant 0 : index
    %c512 = arith.constant 512 : index
    %14 = vector.load %arg4[%c0_11, %c512] : memref<8x1024xf32, #tpu.memory_space<vmem>>, vector<8x49xf32>
    tpu.vector_store %arg4[%c0_11, %c512], %13 {strides = array<i32>} : memref<8x1024xf32, #tpu.memory_space<vmem>>, vector<8x49xf32>,
    %15 = vector.extract_strided_slice %2 {offsets = [40, 0], sizes = [8, 49], strides = [1, 1]} : vector<64x49xf32> to vector<8x49xf32>
    %c0_12 = arith.constant 0 : index
    %c640 = arith.constant 640 : index
    %16 = vector.load %arg4[%c0_12, %c640] : memref<8x1024xf32, #tpu.memory_space<vmem>>, vector<8x49xf32>
    tpu.vector_store %arg4[%c0_12, %c640], %15 {strides = array<i32>} : memref<8x1024xf32, #tpu.memory_space<vmem>>, vector<8x49xf32>,
    %17 = vector.extract_strided_slice %2 {offsets = [48, 0], sizes = [8, 49], strides = [1, 1]} : vector<64x49xf32> to vector<8x49xf32>
    %c0_13 = arith.constant 0 : index
    %c768 = arith.constant 768 : index
    %18 = vector.load %arg4[%c0_13, %c768] : memref<8x1024xf32, #tpu.memory_space<vmem>>, vector<8x49xf32>
    tpu.vector_store %arg4[%c0_13, %c768], %17 {strides = array<i32>} : memref<8x1024xf32, #tpu.memory_space<vmem>>, vector<8x49xf32>,
    %19 = vector.extract_strided_slice %2 {offsets = [56, 0], sizes = [8, 49], strides = [1, 1]} : vector<64x49xf32> to vector<8x49xf32>
    %c0_14 = arith.constant 0 : index
    %c896 = arith.constant 896 : index
    %20 = vector.load %arg4[%c0_14, %c896] : memref<8x1024xf32, #tpu.memory_space<vmem>>, vector<8x49xf32>
    tpu.vector_store %arg4[%c0_14, %c896], %19 {strides = array<i32>} : memref<8x1024xf32, #tpu.memory_space<vmem>>, vector<8x49xf32>,
    %c0_15 = arith.constant 0 : index
    %c0_16 = arith.constant 0 : index
    %21 = vector.load %arg4[%c0_15, %c0_16] : memref<8x1024xf32, #tpu.memory_space<vmem>>, vector<8x1024xf32>
    %22 = arith.mulf %21, %21 : vector<8x1024xf32>
    %c0_17 = arith.constant 0 : index
    %c0_18 = arith.constant 0 : index
    %23 = vector.load %arg2[%c0_17, %c0_18] : memref<1024x49xf32, #tpu.memory_space<vmem>>, vector<1024x49xf32>
    %cst_19 = arith.constant dense<0.000000e+00> : vector<8x49xf32>
    %24 = tpu.matmul %22, %23, %cst_19 {dimension_numbers = #tpu.dot_dimension_numbers<[1], [0], [0], [1], [0, 0, 1, 1], [], []>} : vector<8x1024xf32>, vector<1024x49xf32>, vector<8x49xf32> -> vector<8x49xf32>
    %c0_20 = arith.constant 0 : index
    %c0_21 = arith.constant 0 : index
    %25 = vector.load %arg3[%c0_20, %c0_21] : memref<49x1024xf32, #tpu.memory_space<vmem>>, vector<49x1024xf32>
    %cst_22 = arith.constant dense<0.000000e+00> : vector<8x1024xf32>
    %26 = tpu.matmul %24, %25, %cst_22 {dimension_numbers = #tpu.dot_dimension_numbers<[1], [0], [0], [1], [0, 0, 1, 1], [], []>} : vector<8x49xf32>, vector<49x1024xf32>, vector<8x1024xf32> -> vector<8x1024xf32>
    %27 = math.sqrt %26 : vector<8x1024xf32>
    %28 = arith.mulf %21, %27 : vector<8x1024xf32>
    %cst_23 = arith.constant 1.000000e+00 : f32
    %29 = vector.broadcast %cst_23 : f32 to vector<8x1024xf32>
    %30 = arith.addf %29, %26 : vector<8x1024xf32>
    %31 = arith.divf %28, %30 : vector<8x1024xf32>
    %c0_24 = arith.constant 0 : index
    %c0_25 = arith.constant 0 : index
    %32 = vector.load %arg4[%c0_24, %c0_25] : memref<8x1024xf32, #tpu.memory_space<vmem>>, vector<8x1024xf32>
    tpu.vector_store %arg4[%c0_24, %c0_25], %31 {strides = array<i32>} : memref<8x1024xf32, #tpu.memory_space<vmem>>, vector<8x1024xf32>,
    return
  }
}

</mosaic_0001>

<bundles_post_ra>
// kernel: primary_caps_forward.1
= control target key start
LH: loop header
LB: loop body
LE: loop exit
PB: predicated region body
PF: predicated region fallthrough
CT: control target
= control target key end

     0   :  { %vm35_vm0 = vcmask 596992   ;;  %vm60_vm1 = vcmask 1040384   ;;  %vm1520_vm2 = vmmov 1   ;;  %vm177_vm4 = vcmask 400384   ;;  %s2338_s1 = inlined_call_operand.vmem [shape: f32[73,49], index: 1, kind: input, shape index: {}]   ;;  %s2339_s0 = inlined_call_operand.vmem [shape: f32[64,73], index: 0, kind: input, shape index: {}]   ;;  %s2340_s2 = inlined_call_operand.vmem [shape: f32[1024,49], index: 2, kind: input, shape index: {}]   ;;  %s2341_s4 = inlined_call_operand.vmem [shape: f32[8,1024], index: 4, kind: output, shape index: {}]   ;;  %s2342_s3 = inlined_call_operand.vmem [shape: f32[49,1024], index: 3, kind: input, shape index: {}]  }
   0x1   :  { %v25_v0 = vld [vmem:[%s2338_s1] sm:$0xff]  ;;  %v26_v1 = vld [vmem:[%s2338_s1 + $0x8] sm:$0xff]  ;;  %v27_v2 = vld [vmem:[%s2338_s1 + $0x10] sm:$0xff] }
   0x2   :  { %v1288_v3 = vpack.c.bf16 %v26_v1, %v25_v0  ;;  %v28_v4 = vld [vmem:[%s2338_s1 + $0x18] sm:$0xff]  ;;  %v29_v6 = vld [vmem:[%s2338_s1 + $0x20] sm:$0xff]  ;;  %v30_v7 = vld [vmem:[%s2338_s1 + $0x28] sm:$0xff] }
   0x3   :  { %v1292_v5 = vpack.c.bf16 %v28_v4, %v27_v2  ;;  %v17_v8 = vld [vmem:[%s2339_s0] sm:$0xff]  ;;  %v1296_v9 = vpack.c.bf16 %v30_v7, %v29_v6  ;;  %v31_v10 = vld [vmem:[%s2338_s1 + $0x30] sm:$0xff]  ;;  %v32_v11 = vld [vmem:[%s2338_s1 + $0x38] sm:$0xff] }
   0x4   :  { %1289 = vmatprep.subr.bf16.mxu0 %v1288_v3  ;;  %1276 = vmatprep.mubr.msk.f32.mxu0 %vm35_vm0, %v17_v8  ;;  %v218_v12 = vld [vmem:[%s2340_s2 + $0x80] sm:$0xff]  ;;  %v219_v13 = vld [vmem:[%s2340_s2 + $0x88] sm:$0xff]  ;;  %v220_v17 = vld [vmem:[%s2340_s2 + $0x90] sm:$0xff]  ;;  %v1300_v20 = vpack.c.bf16 %v32_v11, %v31_v10 }
   0x5   :  { %1291 = vmatpush3.bf16.msra.mxu0 %v1288_v3  ;;  %v1310_v14 = vpack.c.bf16 %v219_v13, %v218_v12  ;;  %v202_v15 = vld [vmem:[%s2340_s2] sm:$0xff]  ;;  %v203_v16 = vld [vmem:[%s2340_s2 + $0x8] sm:$0xff]  ;;  %v221_v19 = vld [vmem:[%s2340_s2 + $0x98] sm:$0xff] }
   0x6   :  { %1293 = vmatprep.subr.bf16.mxu0 %v1292_v5  ;;  %v1312_v18 = vpack.c.bf16 %v203_v16, %v202_v15  ;;  %v33_v21 = vld [vmem:[%s2338_s1 + $0x40] sm:$0xff]  ;;  %v1314_v22 = vpack.c.bf16 %v221_v19, %v220_v17  ;;  %v204_v23 = vld [vmem:[%s2340_s2 + $0x10] sm:$0xff]  ;;  %v205_v24 = vld [vmem:[%s2340_s2 + $0x18] sm:$0xff] }
   0x7   :  { %1311 = vmatprep.subr.bf16.mxu1 %v1310_v14  ;;  %v34_v25 = vld [vmem:[%s2338_s1 + $0x48] sm:$0x1]  ;;  %v1316_v26 = vpack.c.bf16 %v205_v24, %v204_v23  ;;  %v222_v27 = vld [vmem:[%s2340_s2 + $0xa0] sm:$0xff]  ;;  %v224_v33 = vld [vmem:[%s2340_s2 + $0xb0] sm:$0xff] }
   0x8   :  { %1313 = vmatpush3.bf16.msra.mxu1 %v1312_v18  ;;  %v223_v28 = vld [vmem:[%s2340_s2 + $0xa8] sm:$0xff]  ;;  %v206_v30 = vld [vmem:[%s2340_s2 + $0x20] sm:$0xff]  ;;  %v1304_v32 = vpack.c.bf16 %v34_v25, %v33_v21  ;;  %v225_v34 = vld [vmem:[%s2340_s2 + $0xb8] sm:$0xff] }
   0x9   :  { %1295 = vmatpush3.bf16.msra.mxu0 %v1292_v5  ;;  %1315 = vmatprep.subr.bf16.mxu1 %v1314_v22  ;;  %v1318_v29 = vpack.c.bf16 %v223_v28, %v222_v27  ;;  %v207_v31 = vld [vmem:[%s2340_s2 + $0x28] sm:$0xff]  ;;  %vm1624_vm3 = vmpackc.low %vm60_vm1, %vm1520_vm2  ;;  %v250_v36 = vld [vmem:[%s2340_s2 + $0x180] sm:$0xff]  ;;  %v1322_v39 = vpack.c.bf16 %v225_v34, %v224_v33 }
   0xa   :  { %1297 = vmatprep.subr.bf16.mxu0 %v1296_v9  ;;  %v251_v37 = vld [vmem:[%s2340_s2 + $0x188] sm:$0xff]  ;;  %v1320_v38 = vpack.c.bf16 %v207_v31, %v206_v30  ;;  %v208_v40 = vld [vmem:[%s2340_s2 + $0x30] sm:$0xff]  ;;  %v209_v41 = vld [vmem:[%s2340_s2 + $0x38] sm:$0xff] }
   0xb   :  { %v226_v42 = vld [vmem:[%s2340_s2 + $0xc0] sm:$0xff]  ;;  %v227_v43 = vld [vmem:[%s2340_s2 + $0xc8] sm:$0xff]  ;;  %v1342_v44 = vpack.c.bf16 %v251_v37, %v250_v36  ;;  %v252_v47 = vld [vmem:[%s2340_s2 + $0x190] sm:$0xff]  ;;  %v1324_v49 = vpack.c.bf16 %v209_v41, %v208_v40 }
   0xc   :  { %1317 = vmatpush3.bf16.msra.mxu1 %v1316_v26  ;;  %v234_v45 = vld [vmem:[%s2340_s2 + $0x100] sm:$0xff]  ;;  %v235_v46 = vld [vmem:[%s2340_s2 + $0x108] sm:$0xff]  ;;  %v253_v48 = vld [vmem:[%s2340_s2 + $0x198] sm:$0xff]  ;;  %v1326_v50 = vpack.c.bf16 %v227_v43, %v226_v42  ;;  %v1521_v26 = vmov 0.0  }
   0xd   :  { %1299 = vmatpush3.bf16.msra.mxu0 %v1296_v9  ;;  %1319 = vmatprep.subr.bf16.mxu1 %v1318_v29  ;;  %v210_v51 = vld [vmem:[%s2340_s2 + $0x40] sm:$0xff]  ;;  %v211_v52 = vld [vmem:[%s2340_s2 + $0x48] sm:$0xff]  ;;  %v1344_v54 = vpack.c.bf16 %v235_v46, %v234_v45  ;;  %v228_v55 = vld [vmem:[%s2340_s2 + $0xd0] sm:$0xff]  ;;  %v1346_v58 = vpack.c.bf16 %v253_v48, %v252_v47  ;;  %170 = vst [vmem:[%s2341_s4 + $0x8] sm:$0xff] %v1521_v26 }
   0xe   :  { %1301 = vmatprep.subr.bf16.mxu0 %v1300_v20  ;;  %v18_v53 = vld [vmem:[%s2339_s0 + $0x8] sm:$0xff]  ;;  %v229_v56 = vld [vmem:[%s2340_s2 + $0xd8] sm:$0xff]  ;;  %v19_v57 = vld [vmem:[%s2339_s0 + $0x10] sm:$0xff]  ;;  %v1328_v63 = vpack.c.bf16 %v211_v52, %v210_v51  ;;  %169 = vst [vmem:[%s2341_s4] sm:$0xff] %v1521_v26 }
   0xf   :  { %v236_v59 = vld [vmem:[%s2340_s2 + $0x110] sm:$0xff]  ;;  %v237_v60 = vld [vmem:[%s2340_s2 + $0x118] sm:$0xff]  ;;  %v254_v61 = vld [vmem:[%s2340_s2 + $0x1a0] sm:$0xff]  ;;  %v1330_v0 = vpack.c.bf16 %v229_v56, %v228_v55  ;;  %171 = vst [vmem:[%s2341_s4 + $0x10] sm:$0xff] %v1521_v26 }
  0x10   :  { %1321 = vmatpush3.bf16.msra.mxu1 %v1320_v38  ;;  %v255_v62 = vld [vmem:[%s2340_s2 + $0x1a8] sm:$0xff]  ;;  %v20_v1 = vld [vmem:[%s2339_s0 + $0x18] sm:$0xff]  ;;  %v1348_v2 = vpack.c.bf16 %v237_v60, %v236_v59  ;;  %v21_v3 = vld [vmem:[%s2339_s0 + $0x20] sm:$0xff]  ;;  %172 = vst [vmem:[%s2341_s4 + $0x18] sm:$0xff] %v1521_v26 }
  0x11   :  { %1303 = vmatpush3.bf16.msra.mxu0 %v1300_v20  ;;  %1323 = vmatprep.subr.bf16.mxu1 %v1322_v39  ;;  %v1350_v4 = vpack.c.bf16 %v255_v62, %v254_v61  ;;  %v238_v5 = vld [vmem:[%s2340_s2 + $0x120] sm:$0xff]  ;;  %v239_v6 = vld [vmem:[%s2340_s2 + $0x128] sm:$0xff]  ;;  %v256_v7 = vld [vmem:[%s2340_s2 + $0x1b0] sm:$0xff]  ;;  %173 = vst [vmem:[%s2341_s4 + $0x20] sm:$0xff] %v1521_v26 }
  0x12   :  { %1306 = vmatprep.subr.msk.bf16.mxu0 %vm1624_vm3, %v1304_v32  ;;  %v257_v8 = vld [vmem:[%s2340_s2 + $0x1b8] sm:$0xff]  ;;  %v22_v9 = vld [vmem:[%s2339_s0 + $0x28] sm:$0xff]  ;;  %v1352_v10 = vpack.c.bf16 %v239_v6, %v238_v5  ;;  %v23_v11 = vld [vmem:[%s2339_s0 + $0x30] sm:$0xff]  ;;  %174 = vst [vmem:[%s2341_s4 + $0x28] sm:$0xff] %v1521_v26 }
  0x13   :  { %v1354_v12 = vpack.c.bf16 %v257_v8, %v256_v7  ;;  %v240_v13 = vld [vmem:[%s2340_s2 + $0x130] sm:$0xff]  ;;  %v241_v14 = vld [vmem:[%s2340_s2 + $0x138] sm:$0xff]  ;;  %v258_v15 = vld [vmem:[%s2340_s2 + $0x1c0] sm:$0xff]  ;;  %175 = vst [vmem:[%s2341_s4 + $0x30] sm:$0xff] %v1521_v26 }
  0x14   :  { %1325 = vmatpush3.bf16.msra.mxu1 %v1324_v49  ;;  %v259_v16 = vld [vmem:[%s2340_s2 + $0x1c8] sm:$0xff]  ;;  %v24_v17 = vld [vmem:[%s2339_s0 + $0x38] sm:$0xff]  ;;  %v1356_v18 = vpack.c.bf16 %v241_v14, %v240_v13  ;;  %v212_v20 = vld [vmem:[%s2340_s2 + $0x50] sm:$0xff]  ;;  %176 = vst [vmem:[%s2341_s4 + $0x38] sm:$0xff] %v1521_v26 }
  0x15   :  { %1309 = vmatpush3.bf16.msk.msra.mxu0 %vm1624_vm3, %v1304_v32  ;;  %1327 = vmatprep.subr.bf16.mxu1 %v1326_v50  ;;  %v1358_v19 = vpack.c.bf16 %v259_v16, %v258_v15  ;;  %v213_v21 = vld [vmem:[%s2340_s2 + $0x58] sm:$0xff]  ;;  %v242_v22 = vld [vmem:[%s2340_s2 + $0x140] sm:$0xff]  ;;  %v243_v24 = vld [vmem:[%s2340_s2 + $0x148] sm:$0xff] }
  0x16   :  { %1343 = vmatprep.subr.bf16.mxu0 %v1342_v44  ;;  %v1332_v23 = vpack.c.bf16 %v213_v21, %v212_v20  ;;  %v1360_v25 = vpack.c.bf16 %v243_v24, %v242_v22  ;;  %v230_v27 = vld [vmem:[%s2340_s2 + $0xe0] sm:$0xff]  ;;  %v231_v28 = vld [vmem:[%s2340_s2 + $0xe8] sm:$0xff]  ;;  %v260_v29 = vld [vmem:[%s2340_s2 + $0x1d0] sm:$0xff] }
  0x17   :  { %v1334_v30 = vpack.c.bf16 %v231_v28, %v230_v27  ;;  %v261_v31 = vld [vmem:[%s2340_s2 + $0x1d8] sm:$0xff]  ;;  %v214_v32 = vld [vmem:[%s2340_s2 + $0x60] sm:$0xff]  ;;  %v215_v33 = vld [vmem:[%s2340_s2 + $0x68] sm:$0xff] }
  0x18   :  { %1277 = vmatmul.mubr.msk.f32.vlgmr.msra.gmra.mrb[0].mxu0 %vm35_vm0, %v18_v53  ;;  %1329 = vmatpush3.bf16.msra.mxu1 %v1328_v63  ;;  %v1362_v34 = vpack.c.bf16 %v261_v31, %v260_v29  ;;  %v1336_v35 = vpack.c.bf16 %v215_v33, %v214_v32  ;;  %v244_v36 = vld [vmem:[%s2340_s2 + $0x150] sm:$0xff]  ;;  %v245_v37 = vld [vmem:[%s2340_s2 + $0x158] sm:$0xff]  ;;  %v262_v41 = vld [vmem:[%s2340_s2 + $0x1e0] sm:$0xff] }
  0x19   :  { %1279 = vmatprep.mubr.msk.f32.mxu0 %vm35_vm0, %v19_v57  ;;  %1345 = vmatpush3.bf16.msra.mxu0 %v1344_v54  ;;  %v1364_v38 = vpack.c.bf16 %v245_v37, %v244_v36  ;;  %v232_v39 = vld [vmem:[%s2340_s2 + $0xf0] sm:$0xff]  ;;  %v233_v40 = vld [vmem:[%s2340_s2 + $0xf8] sm:$0xff]  ;;  %v263_v43 = vld [vmem:[%s2340_s2 + $0x1e8] sm:$0xff] }
  0x1a   :  { %1347 = vmatprep.subr.bf16.mxu0 %v1346_v58  ;;  %1331 = vmatprep.subr.bf16.mxu1 %v1330_v0  ;;  %v1338_v42 = vpack.c.bf16 %v233_v40, %v232_v39  ;;  %v216_v44 = vld [vmem:[%s2340_s2 + $0x70] sm:$0xff]  ;;  %v217_v45 = vld [vmem:[%s2340_s2 + $0x78] sm:$0xff]  ;;  %v1366_v46 = vpack.c.bf16 %v263_v43, %v262_v41  ;;  %v246_v48 = vld [vmem:[%s2340_s2 + $0x160] sm:$0xff] }
  0x1b   :  { %v1340_v47 = vpack.c.bf16 %v217_v45, %v216_v44  ;;  %v247_v49 = vld [vmem:[%s2340_s2 + $0x168] sm:$0xff]  ;;  %v264_v51 = vld [vmem:[%s2340_s2 + $0x1f0] sm:$0xff]  ;;  %v265_v52 = vld [vmem:[%s2340_s2 + $0x1f8] sm:$0xff] }
  0x1c   :  { %1280 = vmatmul.mubr.msk.f32.gmra.mrb[2].mxu0 %vm35_vm0, %v20_v1  ;;  %1333 = vmatpush3.bf16.msra.mxu1 %v1332_v23  ;;  %v1368_v50 = vpack.c.bf16 %v247_v49, %v246_v48  ;;  %v282_v53 = vld [vmem:[%s2340_s2 + $0x280] sm:$0xff]  ;;  %v1370_v54 = vpack.c.bf16 %v265_v52, %v264_v51  ;;  %v283_v55 = vld [vmem:[%s2340_s2 + $0x288] sm:$0xff]  ;;  %v248_v56 = vld [vmem:[%s2340_s2 + $0x170] sm:$0xff] }
  0x1d   :  { %1282 = vmatprep.mubr.msk.f32.mxu0 %vm35_vm0, %v21_v3  ;;  %1349 = vmatpush3.bf16.msra.mxu0 %v1348_v2  ;;  %v249_v57 = vld [vmem:[%s2340_s2 + $0x178] sm:$0xff]  ;;  %v1374_v58 = vpack.c.bf16 %v283_v55, %v282_v53  ;;  %v314_v60 = vld [vmem:[%s2340_s2 + $0x380] sm:$0xff]  ;;  %v315_v61 = vld [vmem:[%s2340_s2 + $0x388] sm:$0xff] }
  0x1e   :  { %1351 = vmatprep.subr.bf16.mxu0 %v1350_v4  ;;  %1335 = vmatprep.subr.bf16.mxu1 %v1334_v30  ;;  %v1372_v59 = vpack.c.bf16 %v249_v57, %v248_v56  ;;  %v1406_v62 = vpack.c.bf16 %v315_v61, %v314_v60  ;;  %v266_v3 = vld [vmem:[%s2340_s2 + $0x200] sm:$0xff]  ;;  %v267_v4 = vld [vmem:[%s2340_s2 + $0x208] sm:$0xff]  ;;  %v284_v5 = vld [vmem:[%s2340_s2 + $0x290] sm:$0xff] }
  0x1f   :  { %v285_v6 = vld [vmem:[%s2340_s2 + $0x298] sm:$0xff]  ;;  %v287_v20 = vld [vmem:[%s2340_s2 + $0x2a8] sm:$0xff]  ;;  %v316_v21 = vld [vmem:[%s2340_s2 + $0x390] sm:$0xff] }
  0x20   :  { %1283 = vmatmul.mubr.msk.f32.gmra.mrb[4].mxu0 %vm35_vm0, %v22_v9  ;;  %1337 = vmatpush3.bf16.msra.mxu1 %v1336_v35  ;;  %v269_v13 = vld [vmem:[%s2340_s2 + $0x218] sm:$0xff]  ;;  %v1378_v16 = vpack.c.bf16 %v285_v6, %v284_v5  ;;  %v270_v30 = vld [vmem:[%s2340_s2 + $0x220] sm:$0xff]  ;;  %v271_v31 = vld [vmem:[%s2340_s2 + $0x228] sm:$0xff] }
  0x21   :  { %1285 = vmatprep.mubr.msk.f32.mxu0 %vm35_vm0, %v23_v11  ;;  %1353 = vmatpush3.bf16.msra.mxu0 %v1352_v10  ;;  %v1376_v11 = vpack.c.bf16 %v267_v4, %v266_v3  ;;  %v317_v22 = vld [vmem:[%s2340_s2 + $0x398] sm:$0xff]  ;;  %v300_v36 = vld [vmem:[%s2340_s2 + $0x310] sm:$0xff]  ;;  %v318_v40 = vld [vmem:[%s2340_s2 + $0x3a0] sm:$0xff]  ;;  %v1384_v43 = vpack.c.bf16 %v271_v31, %v270_v30 }
  0x22   :  { %1355 = vmatprep.subr.bf16.mxu0 %v1354_v12  ;;  %1339 = vmatprep.subr.bf16.mxu1 %v1338_v42  ;;  %v268_v12 = vld [vmem:[%s2340_s2 + $0x210] sm:$0xff]  ;;  %v1410_v35 = vpack.c.bf16 %v317_v22, %v316_v21  ;;  %v301_v37 = vld [vmem:[%s2340_s2 + $0x318] sm:$0xff]  ;;  %v319_v41 = vld [vmem:[%s2340_s2 + $0x3a8] sm:$0xff] }
  0x23   :  { %v1380_v28 = vpack.c.bf16 %v269_v13, %v268_v12  ;;  %v289_v39 = vld [vmem:[%s2340_s2 + $0x2b8] sm:$0xff]  ;;  %v1412_v44 = vpack.c.bf16 %v301_v37, %v300_v36  ;;  %v272_v45 = vld [vmem:[%s2340_s2 + $0x230] sm:$0xff]  ;;  %v1414_v49 = vpack.c.bf16 %v319_v41, %v318_v40  ;;  %v303_v51 = vld [vmem:[%s2340_s2 + $0x328] sm:$0xff] }
  0x24   :  { %1286 = vmatmul.mubr.msk.f32.gmra.mrb[6].mxu0 %vm35_vm0, %v24_v17  ;;  %1341 = vmatpush3.bf16.msra.mxu1 %v1340_v47  ;;  %v298_v17 = vld [vmem:[%s2340_s2 + $0x300] sm:$0xff]  ;;  %v291_v53 = vld [vmem:[%s2340_s2 + $0x2c8] sm:$0xff]  ;;  %v321_v55 = vld [vmem:[%s2340_s2 + $0x3b8] sm:$0xff] }
  0x25   :  { %1357 = vmatpush3.bf16.msra.mxu0 %v1356_v18  ;;  %1375 = vmatprep.subr.bf16.mxu1 %v1374_v58  ;;  %v299_v18 = vld [vmem:[%s2340_s2 + $0x308] sm:$0xff]  ;;  %v290_v52 = vld [vmem:[%s2340_s2 + $0x2c0] sm:$0xff]  ;;  %v293_v3 = vld [vmem:[%s2340_s2 + $0x2d8] sm:$0xff] }
  0x26   :  { %1359 = vmatprep.subr.bf16.mxu0 %v1358_v19  ;;  %v286_v19 = vld [vmem:[%s2340_s2 + $0x2a0] sm:$0xff]  ;;  %v1408_v29 = vpack.c.bf16 %v299_v18, %v298_v17  ;;  %v275_v60 = vld [vmem:[%s2340_s2 + $0x248] sm:$0xff]  ;;  %v324_v18 = vld [vmem:[%s2340_s2 + $0x3d0] sm:$0xff] }
  0x27   :  { %v322_v4 = vld [vmem:[%s2340_s2 + $0x3c0] sm:$0xff]  ;;  %v323_v5 = vld [vmem:[%s2340_s2 + $0x3c8] sm:$0xff]  ;;  %v309_v30 = vld [vmem:[%s2340_s2 + $0x358] sm:$0xff] }
  0x28   :  { %v1422_v13 = vpack.c.bf16 %v323_v5, %v322_v4  ;;  %v295_v17 = vld [vmem:[%s2340_s2 + $0x2e8] sm:$0xff]  ;;  %v278_v22 = vld [vmem:[%s2340_s2 + $0x260] sm:$0xff]  ;;  %v296_v31 = vld [vmem:[%s2340_s2 + $0x2f0] sm:$0xff] }
  0x29   :  { %1361 = vmatpush3.bf16.msra.mxu0 %v1360_v25  ;;  %v280_v37 = vld [vmem:[%s2340_s2 + $0x270] sm:$0xff]  ;;  %v281_v40 = vld [vmem:[%s2340_s2 + $0x278] sm:$0xff]  ;;  %v310_v41 = vld [vmem:[%s2340_s2 + $0x360] sm:$0xff] }
  0x2a   :  { %1363 = vmatprep.subr.bf16.mxu0 %v1362_v34  ;;  %v1382_v34 = vpack.c.bf16 %v287_v20, %v286_v19  ;;  %v325_v19 = vld [vmem:[%s2340_s2 + $0x3d8] sm:$0xff]  ;;  %v627_v4 = vld [vmem:[%s2342_s3 + $0x88] sm:$0xff] }
  0x2d   :  { %1365 = vmatpush3.bf16.msra.mxu0 %v1364_v38  ;;  %v288_v38 = vld [vmem:[%s2340_s2 + $0x2b0] sm:$0xff] }
  0x2e   :  { %1367 = vmatprep.subr.bf16.mxu0 %v1366_v46  ;;  %v273_v46 = vld [vmem:[%s2340_s2 + $0x238] sm:$0xff]  ;;  %v1386_v48 = vpack.c.bf16 %v289_v39, %v288_v38 }
  0x2f   :  { %v1388_v57 = vpack.c.bf16 %v273_v46, %v272_v45  ;;  %v329_v45 = vld [vmem:[%s2340_s2 + $0x3f8] sm:$0xff]  ;;  %v1404_v46 = vpack.c.bf16 %v281_v40, %v280_v37  ;;  %v658_v37 = vld [vmem:[%s2342_s3 + $0x180] sm:$0x1] }
  0x30   :  { %v662_v40 = vld [vmem:[%s2342_s3 + $0x1a0] sm:$0x1] }
  0x31   :  { %1369 = vmatpush3.bf16.msra.mxu0 %v1368_v50  ;;  %v302_v50 = vld [vmem:[%s2340_s2 + $0x320] sm:$0xff] }
  0x32   :  { %1371 = vmatprep.subr.bf16.mxu0 %v1370_v54  ;;  %v320_v54 = vld [vmem:[%s2340_s2 + $0x3b0] sm:$0xff]  ;;  %v1416_v58 = vpack.c.bf16 %v303_v51, %v302_v50  ;;  %v313_v51 = vld [vmem:[%s2340_s2 + $0x378] sm:$0xff] }
  0x33   :  { %v312_v50 = vld [vmem:[%s2340_s2 + $0x370] sm:$0xff] }
  0x35   :  { %1373 = vmatpush3.bf16.msra.mxu0 %v1372_v59  ;;  %v274_v59 = vld [vmem:[%s2340_s2 + $0x240] sm:$0xff] }
  0x36   :  { %1407 = vmatprep.subr.bf16.mxu0 %v1406_v62  ;;  %v1390_v62 = vpack.c.bf16 %v291_v53, %v290_v52  ;;  %v1392_v6 = vpack.c.bf16 %v275_v60, %v274_v59  ;;  %v1436_v53 = vpack.c.bf16 %v313_v51, %v312_v50  ;;  %v610_v59 = vld [vmem:[%s2342_s3] sm:$0xff] }
  0xeb   :  { %v1278_v63 = vpop.f32.mrb[0].mxu0 }
  0xec   :  { %179 = vst.msk [vmem:[%s2341_s4 + $0x8] sm:$0xff] %vm177_vm4, %v1278_v63  ;;  %v130_v0 = vpop.f32.mrb[1].mxu0  ;;  %v1418_v63 = vpack.c.bf16 %v321_v55, %v320_v54 }
  0xed   :  { %178 = vst.msk [vmem:[%s2341_s4] sm:$0xff] %vm177_vm4, %v130_v0  ;;  %v304_v0 = vld [vmem:[%s2340_s2 + $0x330] sm:$0xff] }
  0xef   :  { %v1281_v1 = vpop.f32.mrb[2].mxu0 }
  0xf0   :  { %181 = vst.msk [vmem:[%s2341_s4 + $0x18] sm:$0xff] %vm177_vm4, %v1281_v1  ;;  %v140_v2 = vpop.f32.mrb[3].mxu0  ;;  %v305_v1 = vld [vmem:[%s2340_s2 + $0x338] sm:$0xff] }
  0xf1   :  { %180 = vst.msk [vmem:[%s2341_s4 + $0x10] sm:$0xff] %vm177_vm4, %v140_v2  ;;  %v292_v2 = vld [vmem:[%s2340_s2 + $0x2d0] sm:$0xff] }
  0xf2   :  { %v1394_v12 = vpack.c.bf16 %v293_v3, %v292_v2  ;;  %v614_v2 = vld [vmem:[%s2342_s3 + $0x20] sm:$0xff] }
  0xf3   :  { %v1885_v7 = vld [vmem:[%s2341_s4 + $0x8] sm:$0xff]  ;;  %v1284_v8 = vpop.f32.mrb[4].mxu0  ;;  %v622_v3 = vld [vmem:[%s2342_s3 + $0x60] sm:$0xff] }
  0xf4   :  { %v195_v9 = vmul.f32 %v1885_v7, %v1885_v7  ;;  %v1892_v10 = vld [vmem:[%s2341_s4] sm:$0xff]  ;;  %183 = vst.msk [vmem:[%s2341_s4 + $0x28] sm:$0xff] %vm177_vm4, %v1284_v8  ;;  %v150_v14 = vpop.f32.mrb[5].mxu0  ;;  %v1420_v8 = vpack.c.bf16 %v305_v1, %v304_v0  ;;  %v1464_v5 = vpack.c.bf16 %v622_v3, %v614_v2  ;;  %v628_v2 = vld [vmem:[%s2342_s3 + $0x90] sm:$0xff] }
  0xf5   :  { %v194_v15 = vmul.f32 %v1892_v10, %v1892_v10  ;;  %182 = vst.msk [vmem:[%s2341_s4 + $0x20] sm:$0xff] %vm177_vm4, %v150_v14  ;;  %v306_v14 = vld [vmem:[%s2340_s2 + $0x340] sm:$0xff]  ;;  %v636_v3 = vld [vmem:[%s2342_s3 + $0xd0] sm:$0xff] }
  0xf6   :  { %394 = vmatprep.mubr.f32.mxu1 %v195_v9  ;;  %v276_v9 = vld [vmem:[%s2340_s2 + $0x250] sm:$0xff] }
  0xf7   :  { %395 = vmatmul.mubr.f32.vlgmr.msra.gmra.mrb[0].mxu1 %v194_v15  ;;  %v1931_v23 = vld [vmem:[%s2341_s4 + $0x18] sm:$0xff]  ;;  %v1287_v24 = vpop.f32.mrb[6].mxu0  ;;  %v307_v15 = vld [vmem:[%s2340_s2 + $0x348] sm:$0xff] }
  0xf8   :  { %1377 = vmatpush3.bf16.msra.mxu1 %v1376_v11  ;;  %v197_v25 = vmul.f32 %v1931_v23, %v1931_v23  ;;  %v1938_v27 = vld [vmem:[%s2341_s4 + $0x10] sm:$0xff]  ;;  %185 = vst.msk [vmem:[%s2341_s4 + $0x38] sm:$0xff] %vm177_vm4, %v1287_v24  ;;  %v160_v32 = vpop.f32.mrb[7].mxu0  ;;  %v277_v11 = vld [vmem:[%s2340_s2 + $0x258] sm:$0xff]  ;;  %v1424_v21 = vpack.c.bf16 %v307_v15, %v306_v14  ;;  %v279_v24 = vld [vmem:[%s2340_s2 + $0x268] sm:$0xff] }
  0xf9   :  { %1379 = vmatprep.subr.bf16.mxu1 %v1378_v16  ;;  %v196_v33 = vmul.f32 %v1938_v27, %v1938_v27  ;;  %184 = vst.msk [vmem:[%s2341_s4 + $0x30] sm:$0xff] %vm177_vm4, %v160_v32  ;;  %v294_v16 = vld [vmem:[%s2340_s2 + $0x2e0] sm:$0xff]  ;;  %v1396_v20 = vpack.c.bf16 %v277_v11, %v276_v9  ;;  %v297_v32 = vld [vmem:[%s2340_s2 + $0x2f8] sm:$0xff]  ;;  %v639_v14 = vld [vmem:[%s2342_s3 + $0xe8] sm:$0xff] }
  0xfa   :  { %464 = vmatprep.mubr.f32.mxu0 %v197_v25  ;;  %v1398_v25 = vpack.c.bf16 %v295_v17, %v294_v16  ;;  %v1402_v38 = vpack.c.bf16 %v297_v32, %v296_v31  ;;  %v626_v9 = vld [vmem:[%s2342_s3 + $0x80] sm:$0xff] }
  0xfb   :  { %465 = vmatmul.mubr.f32.vlgmr.msra.gmra.mrb[8].mxu0 %v196_v33  ;;  %v1977_v42 = vld [vmem:[%s2341_s4 + $0x28] sm:$0xff]  ;;  %v326_v33 = vld [vmem:[%s2340_s2 + $0x3e0] sm:$0xff] }
  0xfc   :  { %1381 = vmatpush3.bf16.msra.mxu1 %v1380_v28  ;;  %1409 = vmatpush3.bf16.msra.mxu0 %v1408_v29  ;;  %v199_v47 = vmul.f32 %v1977_v42, %v1977_v42  ;;  %v1426_v28 = vpack.c.bf16 %v325_v19, %v324_v18  ;;  %v308_v29 = vld [vmem:[%s2340_s2 + $0x350] sm:$0xff]  ;;  %v634_v11 = vld [vmem:[%s2342_s3 + $0xc0] sm:$0xff]  ;;  %v643_v19 = vld [vmem:[%s2342_s3 + $0x108] sm:$0xff] }
  0xfd   :  { %1383 = vmatprep.subr.bf16.mxu1 %v1382_v34  ;;  %1411 = vmatprep.subr.bf16.mxu0 %v1410_v35  ;;  %v327_v34 = vld [vmem:[%s2340_s2 + $0x3e8] sm:$0xff]  ;;  %v1400_v35 = vpack.c.bf16 %v279_v24, %v278_v22  ;;  %v1428_v36 = vpack.c.bf16 %v309_v30, %v308_v29  ;;  %v630_v15 = vld [vmem:[%s2342_s3 + $0xa0] sm:$0xff] }
  0xfe   :  { %534 = vmatprep.mubr.f32.mxu1 %v199_v47  ;;  %v1430_v39 = vpack.c.bf16 %v327_v34, %v326_v33  ;;  %v638_v16 = vld [vmem:[%s2342_s3 + $0xe0] sm:$0xff]  ;;  %v655_v29 = vld [vmem:[%s2342_s3 + $0x168] sm:$0xff] }
  0xff   :  { %v2008_v56 = vld [vmem:[%s2341_s4 + $0x38] sm:$0xff]  ;;  %v1468_v18 = vpack.c.bf16 %v638_v16, %v630_v15  ;;  %v642_v22 = vld [vmem:[%s2342_s3 + $0x100] sm:$0xff]  ;;  %v659_v34 = vld [vmem:[%s2342_s3 + $0x188] sm:$0x1] }
 0x100   :  { %1385 = vmatpush3.bf16.msra.mxu1 %v1384_v43  ;;  %1413 = vmatpush3.bf16.msra.mxu0 %v1412_v44  ;;  %v201_v61 = vmul.f32 %v2008_v56, %v2008_v56  ;;  %v311_v43 = vld [vmem:[%s2340_s2 + $0x368] sm:$0xff]  ;;  %v328_v44 = vld [vmem:[%s2340_s2 + $0x3f0] sm:$0xff]  ;;  %v650_v24 = vld [vmem:[%s2342_s3 + $0x140] sm:$0xff] }
 0x101   :  { %1387 = vmatprep.subr.bf16.mxu1 %v1386_v48  ;;  %1415 = vmatprep.subr.bf16.mxu0 %v1414_v49  ;;  %v1432_v47 = vpack.c.bf16 %v311_v43, %v310_v41  ;;  %v2105_v48 = vld [vmem:[%s2341_s4 + $0x20] sm:$0xff]  ;;  %v1434_v49 = vpack.c.bf16 %v329_v45, %v328_v44  ;;  %v2118_v54 = vld [vmem:[%s2341_s4 + $0x30] sm:$0xff]  ;;  %v625_v15 = vld [vmem:[%s2342_s3 + $0x78] sm:$0xff] }
 0x102   :  { %604 = vmatprep.mubr.f32.mxu0 %v201_v61  ;;  %v198_v52 = vmul.f32 %v2105_v48, %v2105_v48  ;;  %v200_v55 = vmul.f32 %v2118_v54, %v2118_v54  ;;  %v618_v61 = vld [vmem:[%s2342_s3 + $0x40] sm:$0xff]  ;;  %v616_v16 = vld [vmem:[%s2342_s3 + $0x30] sm:$0xff] }
 0x103   :  { %v1440_v0 = vpack.c.bf16 %v618_v61, %v610_v59  ;;  %v646_v30 = vld [vmem:[%s2342_s3 + $0x120] sm:$0xff]  ;;  %v637_v61 = vld [vmem:[%s2342_s3 + $0xd8] sm:$0xff] }
 0x104   :  { %1389 = vmatpush3.bf16.msra.mxu1 %v1388_v57  ;;  %1417 = vmatpush3.bf16.msra.mxu0 %v1416_v58  ;;  %v611_v57 = vld [vmem:[%s2342_s3 + $0x8] sm:$0xff]  ;;  %v654_v31 = vld [vmem:[%s2342_s3 + $0x160] sm:$0xff] }
 0x105   :  { %1391 = vmatprep.subr.bf16.mxu1 %v1390_v62  ;;  %1419 = vmatprep.subr.bf16.mxu0 %v1418_v63  ;;  %v619_v58 = vld [vmem:[%s2342_s3 + $0x48] sm:$0xff]  ;;  %v1472_v33 = vpack.c.bf16 %v654_v31, %v646_v30  ;;  %v657_v30 = vld [vmem:[%s2342_s3 + $0x178] sm:$0xff] }
 0x106   :  { %v1438_v60 = vpack.c.bf16 %v619_v58, %v611_v57  ;;  %v615_v62 = vld [vmem:[%s2342_s3 + $0x28] sm:$0xff]  ;;  %v612_v57 = vld [vmem:[%s2342_s3 + $0x10] sm:$0xff] }
 0x107   :  { %v623_v63 = vld [vmem:[%s2342_s3 + $0x68] sm:$0xff]  ;;  %v620_v58 = vld [vmem:[%s2342_s3 + $0x50] sm:$0xff] }
 0x108   :  { %1393 = vmatpush3.bf16.msra.mxu1 %v1392_v6  ;;  %1421 = vmatpush3.bf16.msra.mxu0 %v1420_v8  ;;  %v1462_v1 = vpack.c.bf16 %v623_v63, %v615_v62  ;;  %v635_v6 = vld [vmem:[%s2342_s3 + $0xc8] sm:$0xff]  ;;  %v1452_v63 = vpack.c.bf16 %v620_v58, %v612_v57 }
 0x109   :  { %1395 = vmatprep.subr.bf16.mxu1 %v1394_v12  ;;  %1423 = vmatprep.subr.bf16.mxu0 %v1422_v13  ;;  %v1442_v8 = vpack.c.bf16 %v635_v6, %v627_v4  ;;  %v631_v12 = vld [vmem:[%s2342_s3 + $0xa8] sm:$0xff]  ;;  %v1444_v13 = vpack.c.bf16 %v634_v11, %v626_v9  ;;  %v645_v4 = vld [vmem:[%s2342_s3 + $0x118] sm:$0xff]  ;;  %v1456_v6 = vpack.c.bf16 %v636_v3, %v628_v2  ;;  %v644_v9 = vld [vmem:[%s2342_s3 + $0x110] sm:$0xff] }
 0x10a   :  { %v1466_v17 = vpack.c.bf16 %v639_v14, %v631_v12  ;;  %v652_v11 = vld [vmem:[%s2342_s3 + $0x150] sm:$0xff]  ;;  %v617_v14 = vld [vmem:[%s2342_s3 + $0x38] sm:$0xff] }
 0x10b   :  { %v1460_v12 = vpack.c.bf16 %v652_v11, %v644_v9 }
 0x10c   :  { %1397 = vmatpush3.bf16.msra.mxu1 %v1396_v20  ;;  %1425 = vmatpush3.bf16.msra.mxu0 %v1424_v21  ;;  %v651_v20 = vld [vmem:[%s2342_s3 + $0x148] sm:$0xff] }
 0x10d   :  { %1399 = vmatprep.subr.bf16.mxu1 %v1398_v25  ;;  %1427 = vmatprep.subr.bf16.mxu0 %v1426_v28  ;;  %v1446_v21 = vpack.c.bf16 %v651_v20, %v643_v19  ;;  %v647_v25 = vld [vmem:[%s2342_s3 + $0x128] sm:$0xff]  ;;  %v1448_v28 = vpack.c.bf16 %v650_v24, %v642_v22  ;;  %v641_v19 = vld [vmem:[%s2342_s3 + $0xf8] sm:$0xff]  ;;  %v660_v20 = vld [vmem:[%s2342_s3 + $0x190] sm:$0x1] }
 0x10e   :  { %v1470_v32 = vpack.c.bf16 %v655_v29, %v647_v25  ;;  %v632_v25 = vld [vmem:[%s2342_s3 + $0xb0] sm:$0xff]  ;;  %v649_v29 = vld [vmem:[%s2342_s3 + $0x138] sm:$0xff] }
 0x110   :  { %1401 = vmatpush3.bf16.msra.mxu1 %v1400_v35  ;;  %1429 = vmatpush3.bf16.msra.mxu0 %v1428_v36  ;;  %v613_v35 = vld [vmem:[%s2342_s3 + $0x18] sm:$0xff] }
 0x111   :  { %1403 = vmatprep.subr.bf16.mxu1 %v1402_v38  ;;  %1431 = vmatprep.subr.bf16.mxu0 %v1430_v39  ;;  %v621_v36 = vld [vmem:[%s2342_s3 + $0x58] sm:$0xff]  ;;  %v663_v38 = vld [vmem:[%s2342_s3 + $0x1a8] sm:$0x1] }
 0x112   :  { %v1450_v39 = vpack.c.bf16 %v621_v36, %v613_v35  ;;  %v665_v36 = vld [vmem:[%s2342_s3 + $0x1b8] sm:$0x1] }
 0x114   :  { %1405 = vmatpush3.bf16.msra.mxu1 %v1404_v46  ;;  %1433 = vmatpush3.bf16.msra.mxu0 %v1432_v47 }
 0x115   :  { %1435 = vmatprep.subr.bf16.mxu0 %v1434_v49  ;;  %1439 = vmatprep.subr.bf16.mxu1 %v1438_v60  ;;  %v629_v60 = vld [vmem:[%s2342_s3 + $0x98] sm:$0xff] }
 0x117   :  { %535 = vmatmul.mubr.f32.vlgmr.msra.gmra.mrb[2].mxu1 %v198_v52 }
 0x118   :  { %1437 = vmatpush3.bf16.msra.mxu0 %v1436_v53  ;;  %757 = vmatprep.mubr.f32.mxu1 %v1521_v26 }
 0x119   :  { %1441 = vmatpush1.bf16.msra.mxu1 %v1440_v0  ;;  %1463 = vmatprep.subr.bf16.mxu0 %v1462_v1  ;;  %v1454_v1 = vpack.c.bf16 %v637_v61, %v629_v60 }
 0x11a   :  { %1443 = vmatprep.subr.bf16.mxu1 %v1442_v8 }
 0x11b   :  { %605 = vmatmul.mubr.f32.vlgmr.msra.gmra.mrb[10].mxu0 %v200_v55 }
 0x11c   :  { %899 = vmatprep.mubr.f32.mxu0 %v1521_v26  ;;  %1465 = vmatpush1.bf16.msra.mxu0 %v1464_v5  ;;  %v653_v5 = vld [vmem:[%s2342_s3 + $0x158] sm:$0xff] }
 0x11d   :  { %1445 = vmatpush1.bf16.msra.mxu1 %v1444_v13  ;;  %1467 = vmatprep.subr.bf16.mxu0 %v1466_v17  ;;  %v1458_v8 = vpack.c.bf16 %v653_v5, %v645_v4  ;;  %v661_v13 = vld [vmem:[%s2342_s3 + $0x198] sm:$0x1]  ;;  %v624_v17 = vld [vmem:[%s2342_s3 + $0x70] sm:$0xff] }
 0x11e   :  { %1447 = vmatprep.subr.bf16.mxu1 %v1446_v21  ;;  %v1474_v21 = vpack.c.bf16 %v625_v15, %v617_v14  ;;  %v1476_v22 = vpack.c.bf16 %v624_v17, %v616_v16 }
 0x120   :  { %1469 = vmatpush1.bf16.msra.mxu0 %v1468_v18  ;;  %v633_v18 = vld [vmem:[%s2342_s3 + $0xb8] sm:$0xff] }
 0x121   :  { %1449 = vmatpush1.bf16.msra.mxu1 %v1448_v28  ;;  %1471 = vmatprep.subr.bf16.mxu0 %v1470_v32  ;;  %v1478_v24 = vpack.c.bf16 %v641_v19, %v633_v18  ;;  %v640_v28 = vld [vmem:[%s2342_s3 + $0xf0] sm:$0xff]  ;;  %v1482_v32 = vpack.c.bf16 %v657_v30, %v649_v29 }
 0x122   :  { %1086 = vmatprep.subr.msk.mxu1 %vm60_vm1, %v659_v34  ;;  %v1480_v31 = vpack.c.bf16 %v640_v28, %v632_v25  ;;  %v656_v34 = vld [vmem:[%s2342_s3 + $0x170] sm:$0xff] }
 0x124   :  { %1473 = vmatpush1.bf16.msra.mxu0 %v1472_v33  ;;  %v648_v33 = vld [vmem:[%s2342_s3 + $0x130] sm:$0xff] }
 0x125   :  { %1087 = vmatpush1.msk.msra.mxu1 %vm60_vm1, %v658_v37  ;;  %1092 = vmatprep.subr.msk.mxu0 %vm60_vm1, %v663_v38  ;;  %v1484_v35 = vpack.c.bf16 %v656_v34, %v648_v33 }
 0x126   :  { %1451 = vmatprep.subr.bf16.mxu1 %v1450_v39 }
 0x128   :  { %1093 = vmatpush1.msk.msra.mxu0 %vm60_vm1, %v662_v40 }
 0x1ca   :  { %v1148_v41 = vpop.f32.mrb[0].mxu1 }
 0x1cb   :  { %v1149_v43 = vpop.f32.mrb[1].mxu1 }
 0x1cc   :  { %v1150_v44 = vadd.f32 %v1149_v43, %v1148_v41 }
 0x1ce   :  { %v1183_v45 = vpop.f32.mrb[8].mxu0 }
 0x1cf   :  { %v1184_v46 = vpop.f32.mrb[9].mxu0 }
 0x1d0   :  { %v1185_v47 = vadd.f32 %v1184_v46, %v1183_v45 }
 0x1d2   :  { %v467_v49 = vadd.f32 %v1185_v47, %v1150_v44 }
 0x1ea   :  { %v1218_v50 = vpop.f32.mrb[2].mxu1 }
 0x1eb   :  { %v1219_v51 = vpop.f32.mrb[3].mxu1 }
 0x1ec   :  { %v1220_v52 = vadd.f32 %v1219_v51, %v1218_v50 }
 0x1ee   :  { %v537_v53 = vadd.f32 %v1220_v52, %v467_v49  ;;  %v1253_v55 = vpop.f32.mrb[10].mxu0 }
 0x1ef   :  { %v1254_v59 = vpop.f32.mrb[11].mxu0 }
 0x1f0   :  { %v1255_v62 = vadd.f32 %v1254_v59, %v1253_v55 }
 0x1f2   :  { %v607_v0 = vadd.f32 %v1255_v62, %v537_v53 }
 0x1f4   :  { %1088 = vmatmul.mubr.msk.f32.vlgmr.msra.gmra.mrb[4].mxu1 %vm177_vm4, %v607_v0  ;;  %1094 = vmatmul.mubr.msk.f32.vlgmr.msra.gmra.mrb[12].mxu0 %vm177_vm4, %v607_v0 }
 0x1f5   :  { %1453 = vmatpush1.bf16.msra.mxu1 %v1452_v63  ;;  %828 = vmatprep.mubr.f32.mxu1 %v1521_v26 }
 0x1f6   :  { %1455 = vmatprep.subr.bf16.mxu1 %v1454_v1 }
 0x1f9   :  { %1457 = vmatpush1.bf16.msra.mxu1 %v1456_v6 }
 0x1fa   :  { %1459 = vmatprep.subr.bf16.mxu1 %v1458_v8 }
 0x1fd   :  { %1461 = vmatpush1.bf16.msra.mxu1 %v1460_v12 }
 0x1fe   :  { %1089 = vmatprep.subr.msk.mxu1 %vm60_vm1, %v661_v13 }
 0x201   :  { %1090 = vmatpush1.msk.msra.mxu1 %vm60_vm1, %v660_v20 }
 0x202   :  { %1091 = vmatmul.mubr.msk.f32.vlgmr.msra.gmra.mrb[6].mxu1 %vm177_vm4, %v607_v0  ;;  %1475 = vmatprep.subr.bf16.mxu1 %v1474_v21 }
 0x203   :  { %1477 = vmatpush1.bf16.msra.mxu1 %v1476_v22  ;;  %970 = vmatprep.mubr.f32.mxu1 %v1521_v26  ;;  %v664_v26 = vld [vmem:[%s2342_s3 + $0x1b0] sm:$0x1] }
 0x204   :  { %1479 = vmatprep.subr.bf16.mxu1 %v1478_v24 }
 0x207   :  { %1481 = vmatpush1.bf16.msra.mxu1 %v1480_v31 }
 0x208   :  { %1483 = vmatprep.subr.bf16.mxu1 %v1482_v32 }
 0x20b   :  { %1485 = vmatpush1.bf16.msra.mxu1 %v1484_v35 }
 0x20c   :  { %1095 = vmatprep.subr.msk.mxu1 %vm60_vm1, %v665_v36 }
 0x20f   :  { %1096 = vmatpush1.msk.msra.mxu1 %vm60_vm1, %v664_v26 }
 0x210   :  { %1097 = vmatmul.mubr.msk.f32.vlgmr.msra.gmra.mrb[8].mxu1 %vm177_vm4, %v607_v0 }
 0x2c7   :  { %v759_v37 = vpop.f32.mrb[4].mxu1  ;;  %v901_v38 = vpop.f32.mrb[12].mxu0 }
 0x2c8   :  { %1488 = vrsqrt.f32 %v759_v37  ;;  %v761_v39 = vpop.f32.mrb[5].mxu1  ;;  %v903_v40 = vpop.f32.mrb[13].mxu0  ;;  %v1041_v41 = vadd.f32 1.0, %v759_v37  ;;  %v1045_v43 = vadd.f32 1.0, %v901_v38  ;;  %vm979_vm5 = vcmp.eq.f32.partialorder %v759_v37, inf }
 0x2c9   :  { %1490 = vrsqrt.f32 %v901_v38  ;;  %v1042_v44 = vadd.f32 1.0, %v761_v39  ;;  %v1046_v45 = vadd.f32 1.0, %v903_v40  ;;  %vm981_vm6 = vcmp.eq.f32.partialorder %v759_v37, 0.0 }
 0x2ca   :  { %1492 = vrsqrt.f32 %v761_v39  ;;  %v982_v50 = vand.u32 2147483648, %v759_v37  ;;  %vm1007_vm7 = vcmp.eq.f32.partialorder %v901_v38, inf  ;;  %vm1009_vm8 = vcmp.eq.f32.partialorder %v901_v38, 0.0 }
 0x2cb   :  { %1494 = vrcp.f32 %v1041_v41  ;;  %v1010_v55 = vand.u32 2147483648, %v901_v38  ;;  %vm986_vm9 = vcmp.eq.f32.partialorder %v761_v39, inf  ;;  %v989_v61 = vand.u32 2147483648, %v761_v39 }
 0x2cc   :  { %1496 = vrsqrt.f32 %v903_v40  ;;  %vm988_vm10 = vcmp.eq.f32.partialorder %v761_v39, 0.0  ;;  %vm1014_vm11 = vcmp.eq.f32.partialorder %v903_v40, inf  ;;  %v1017_v15 = vand.u32 2147483648, %v903_v40 }
 0x2cd   :  { %1498 = vrcp.f32 %v1045_v43  ;;  %vm1016_vm12 = vcmp.eq.f32.partialorder %v903_v40, 0.0 }
 0x2ce   :  { %1500 = vrcp.f32 %v1042_v44 }
 0x2cf   :  { %1502 = vrcp.f32 %v1046_v45 }
 0x2d2   :  { %v1489_v46 = vpop.eup %1488 }
 0x2d3   :  { %v1491_v47 = vpop.eup %1490  ;;  %v978_v49 = vmul.f32 %v1489_v46, %v759_v37 }
 0x2d4   :  { %v1493_v51 = vpop.eup %1492  ;;  %v1006_v52 = vmul.f32 %v1491_v47, %v901_v38 }
 0x2d5   :  { %v980_v53 = vsel %vm979_vm5, %v759_v37, %v978_v49  ;;  %v985_v57 = vmul.f32 %v1493_v51, %v761_v39  ;;  %v830_v58 = vpop.f32.mrb[6].mxu1  ;;  %v1495_v63 = vpop.eup %1494 }
 0x2d6   :  { %v983_v59 = vsel %vm981_vm6, %v982_v50, %v980_v53  ;;  %v1008_v60 = vsel %vm1007_vm7, %v901_v38, %v1006_v52  ;;  %1504 = vrsqrt.f32 %v830_v58  ;;  %v832_v62 = vpop.f32.mrb[7].mxu1  ;;  %v1497_v3 = vpop.eup %1496  ;;  %v1043_v6 = vadd.f32 1.0, %v830_v58 }
 0x2d7   :  { %v1033_v0 = vmul.f32 %v983_v59, %v1892_v10  ;;  %v1011_v1 = vsel %vm1009_vm8, %v1010_v55, %v1008_v60  ;;  %v987_v2 = vsel %vm986_vm9, %v761_v39, %v985_v57  ;;  %v1499_v8 = vpop.eup %1498  ;;  %v1013_v12 = vmul.f32 %v1497_v3, %v903_v40 }
 0x2d8   :  { %v1037_v4 = vmul.f32 %v1011_v1, %v2105_v48  ;;  %v990_v5 = vsel %vm988_vm10, %v989_v61, %v987_v2  ;;  %1506 = vrsqrt.f32 %v832_v62  ;;  %v1501_v13 = vpop.eup %1500  ;;  %v1044_v48 = vadd.f32 1.0, %v832_v62 }
 0x2d9   :  { %v1050_v9 = vmul.f32 %v1495_v63, %v1033_v0  ;;  %v1034_v11 = vmul.f32 %v990_v5, %v1885_v7  ;;  %v1015_v16 = vsel %vm1014_vm11, %v903_v40, %v1013_v12  ;;  %1508 = vrcp.f32 %v1043_v6  ;;  %v1503_v18 = vpop.eup %1502 }
 0x2da   :  { %v1058_v14 = vmul.f32 %v1499_v8, %v1037_v4  ;;  %v1018_v17 = vsel %vm1016_vm12, %v1017_v15, %v1015_v16  ;;  %1510 = vrcp.f32 %v1044_v48  ;;  %vm993_vm13 = vcmp.eq.f32.partialorder %v830_v58, inf }
 0x2db   :  { %1065 = vst [vmem:[%s2341_s4] sm:$0xff] %v1050_v9  ;;  %v1052_v10 = vmul.f32 %v1501_v13, %v1034_v11  ;;  %v1038_v7 = vmul.f32 %v1018_v17, %v1977_v42  ;;  %v996_v22 = vand.u32 2147483648, %v830_v58  ;;  %vm995_vm14 = vcmp.eq.f32.partialorder %v830_v58, 0.0 }
 0x2dc   :  { %1069 = vst [vmem:[%s2341_s4 + $0x20] sm:$0xff] %v1058_v14  ;;  %vm1000_vm15 = vcmp.eq.f32.partialorder %v832_v62, inf  ;;  %v1003_v32 = vand.u32 2147483648, %v832_v62  ;;  %vm1002_vm0 = vcmp.eq.f32.partialorder %v832_v62, 0.0 }
 0x2dd   :  { %1066 = vst [vmem:[%s2341_s4 + $0x8] sm:$0xff] %v1052_v10  ;;  %v1060_v19 = vmul.f32 %v1503_v18, %v1038_v7 }
 0x2df   :  { %1070 = vst [vmem:[%s2341_s4 + $0x28] sm:$0xff] %v1060_v19 }
 0x2e0   :  { %v1505_v20 = vpop.eup %1504 }
 0x2e1   :  { %v992_v21 = vmul.f32 %v1505_v20, %v830_v58 }
 0x2e2   :  { %v1507_v24 = vpop.eup %1506 }
 0x2e3   :  { %v994_v25 = vsel %vm993_vm13, %v830_v58, %v992_v21  ;;  %v972_v28 = vpop.f32.mrb[8].mxu1  ;;  %v999_v30 = vmul.f32 %v1507_v24, %v832_v62  ;;  %v1509_v33 = vpop.eup %1508 }
 0x2e4   :  { %v997_v29 = vsel %vm995_vm14, %v996_v22, %v994_v25  ;;  %1512 = vrsqrt.f32 %v972_v28  ;;  %v974_v31 = vpop.f32.mrb[9].mxu1  ;;  %v1047_v35 = vadd.f32 1.0, %v972_v28  ;;  %v1511_v39 = vpop.eup %1510  ;;  %vm1021_vm1 = vcmp.eq.f32.partialorder %v972_v28, inf }
 0x2e5   :  { %v1035_v42 = vmul.f32 %v997_v29, %v1938_v27  ;;  %v1001_v34 = vsel %vm1000_vm15, %v832_v62, %v999_v30  ;;  %1514 = vrsqrt.f32 %v974_v31  ;;  %v1048_v38 = vadd.f32 1.0, %v974_v31 }
 0x2e6   :  { %v1004_v26 = vsel %vm1002_vm0, %v1003_v32, %v1001_v34  ;;  %1516 = vrcp.f32 %v1047_v35  ;;  %v1024_v44 = vand.u32 2147483648, %v972_v28  ;;  %vm1023_vm2 = vcmp.eq.f32.partialorder %v972_v28, 0.0 }
 0x2e7   :  { %v1054_v36 = vmul.f32 %v1509_v33, %v1035_v42  ;;  %v1036_v37 = vmul.f32 %v1004_v26, %v1931_v23  ;;  %1518 = vrcp.f32 %v1048_v38  ;;  %vm1028_vm3 = vcmp.eq.f32.partialorder %v974_v31, inf }
 0x2e8   :  { %v1031_v47 = vand.u32 2147483648, %v974_v31  ;;  %vm1030_vm4 = vcmp.eq.f32.partialorder %v974_v31, 0.0 }
 0x2e9   :  { %1067 = vst [vmem:[%s2341_s4 + $0x10] sm:$0xff] %v1054_v36  ;;  %v1056_v40 = vmul.f32 %v1511_v39, %v1036_v37 }
 0x2eb   :  { %1068 = vst [vmem:[%s2341_s4 + $0x18] sm:$0xff] %v1056_v40 }
 0x2ee   :  { %v1513_v27 = vpop.eup %1512 }
 0x2ef   :  { %v1020_v41 = vmul.f32 %v1513_v27, %v972_v28  ;;  %v1515_v43 = vpop.eup %1514 }
 0x2f0   :  { %v1027_v23 = vmul.f32 %v1515_v43, %v974_v31  ;;  %v1517_v51 = vpop.eup %1516 }
 0x2f1   :  { %v1022_v45 = vsel %vm1021_vm1, %v972_v28, %v1020_v41  ;;  %v1519_v57 = vpop.eup %1518 }
 0x2f2   :  { %v1025_v46 = vsel %vm1023_vm2, %v1024_v44, %v1022_v45  ;;  %v1029_v50 = vsel %vm1028_vm3, %v974_v31, %v1027_v23 }
 0x2f3   :  { %v1039_v49 = vmul.f32 %v1025_v46, %v2118_v54  ;;  %v1032_v52 = vsel %vm1030_vm4, %v1031_v47, %v1029_v50 }
 0x2f4   :  { %v1040_v55 = vmul.f32 %v1032_v52, %v2008_v56 }
 0x2f5   :  { %v1062_v53 = vmul.f32 %v1517_v51, %v1039_v49 }
 0x2f6   :  { %v1064_v58 = vmul.f32 %v1519_v57, %v1040_v55 }
 0x2f7   :  { %1071 = vst [vmem:[%s2341_s4 + $0x30] sm:$0xff] %v1062_v53 }
 0x2f8   :  { %1072 = vst [vmem:[%s2341_s4 + $0x38] sm:$0xff] %v1064_v58 }

</bundles_post_ra>
